<compile_context>
chip_gen: v7x
topology: tpu7x:2x2x1
jax: 0.10.0
libtpu: 0.0.40
codegen_flags: <defaults>
</compile_context>

<pallas_src>
import functools

import jax
import jax.numpy as jnp
from jax.experimental import pallas as pl
from jax.experimental.pallas import tpu as pltpu

N_X = 2        # state dim (RLC: v_C, i_L)
N_U = 1        # input dim
N_FEAT = 64    # hidden units of NeuralStateSpaceModel
TS = 1.0       # ForwardEulerSimulator ts (folded into W2/b2 in the wrapper)
CHUNK = 1024   # time steps per grid iteration
ROWS = CHUNK // 128   # y rows per chunk -> one full (8,128) f32 output tile
UNROLL = 16    # inner loop unroll factor


def _ss_sim_kernel(x0_ref, w1x_ref, w2t_ref, b2c_ref, ucon_ref,
                   y_ref, xlast_ref, *, num_chunks, n_last):
    """One grid step = up to CHUNK sequential Euler steps of the neural SS model.

    Refs:
      x0_ref    (2, 1)           VMEM  initial state (column layout)
      w1x_ref   (2, 64)          VMEM  state rows of first Linear
      w2t_ref   (2, 64)          VMEM  second Linear weight (ts pre-folded)
      b2c_ref   (2, 1)           VMEM  second Linear bias, column (ts pre-folded)
      ucon_ref  (CHUNK, 64)      VMEM  precomputed u*W1u + b1 for this chunk
      y_ref     (1, ROWS, 128)   VMEM  output block: y[t] for this chunk (full tile)
      xlast_ref (2, 1)           VMEM  output: carried state / final x_sim[-1]
                                       (constant index_map -> resident accumulator)
    """
    c = pl.program_id(0)

    @pl.when(c == 0)
    def _():
        xlast_ref[...] = x0_ref[...]

    # Loop-invariant weight/bias loads, hoisted out of the step loop.
    w1x0 = w1x_ref[0:1, :]       # (1, 64)
    w1x1 = w1x_ref[1:2, :]       # (1, 64)
    w2t = w2t_ref[...]           # (2, 64)
    b2c = b2c_ref[...]           # (2, 1)

    sub = jax.lax.broadcasted_iota(jnp.int32, (ROWS, 128), 0)
    lane = jax.lax.broadcasted_iota(jnp.int32, (ROWS, 128), 1)
    flat = sub * 128 + lane      # flat[r, l] = r*128 + l = step index within chunk

    def run_chunk(n_upd):
        """n_upd (STATIC) unguarded Euler updates, then freeze + tail-fill y."""
        x_init = xlast_ref[...]                                  # (2, 1)

        def step(j, carry):
            x, y_acc = carry                     # x: (2,1), y_acc: (ROWS,128)
            # Record y[j] = x_j[0] (state BEFORE this update) with one select
            # into the single-vreg y accumulator (off the x->x chain).
            y_acc = jnp.where(flat == j, x[0:1, 0:1], y_acc)
            # b2 folded early: only one dependent add after the XLU reduce.
            xb = x + b2c
            # x-independent layer-1 term (u*W1u + b1), precomputed: a dynamic
            # row load that the scheduler can hoist across steps.
            uc = ucon_ref[pl.ds(j, 1), :]                        # (1, 64)
            # hidden = relu((x-terms) + uc); contraction dim is 2 -> VPU, no MXU.
            h = jnp.maximum((x[0:1, :] * w1x0 + x[1:2, :] * w1x1) + uc, 0.0)
            # x <- (x + b2) + W2 @ h as ONE fused cross-lane reduce + one add
            # (ts already folded into w2t/b2c).
            x = xb + jnp.sum(h * w2t, axis=1, keepdims=True)     # (2, 1)
            return x, y_acc

        y0 = jnp.zeros((ROWS, 128), jnp.float32)
        if n_upd > 0:
            x_fin, y_acc = jax.lax.fori_loop(
                0, n_upd, step, (x_init, y0), unroll=min(UNROLL, n_upd))
        else:
            x_fin, y_acc = x_init, y0
        if n_upd < CHUNK:
            # Frozen tail: covers y[T-1] (= x_{T-1}) and the zero-padded steps
            # with a single select instead of a per-step guard.
            y_acc = jnp.where(flat >= n_upd, x_fin[0:1, 0:1], y_acc)

        y_ref[...] = y_acc.reshape(1, ROWS, 128)   # one unmasked full-tile store
        xlast_ref[...] = x_fin                     # state carry across chunks

    if num_chunks > 1:
        @pl.when(c < num_chunks - 1)
        def _():
            run_chunk(CHUNK)           # interior chunks: no per-step guards

        @pl.when(c == num_chunks - 1)
        def _():
            run_chunk(n_last)          # statically shorter last chunk
    else:
        run_chunk(n_last)


def state_space_wrapper_forward(u_in, x0, params):
    """Functional equivalent of StateSpaceWrapper.forward.

    Args:
      u_in:   (T, 1) input sequence.
      x0:     (2,) current wrapper state self.x_0.
      params: (w1x (2,64), w1u (1,64), b1 (1,64), w2t (2,64), b2 (1,2)).

    Returns (y_out (T, 1), new_x0 (2,)).
    """
    w1x, w1u, b1, w2t, b2 = params
    T = u_in.shape[0]
    num_chunks = -(-T // CHUNK)
    t_pad = num_chunks * CHUNK
    n_last = (T - 1) - (num_chunks - 1) * CHUNK    # Euler updates in last chunk

    u_flat = jnp.zeros((t_pad,), jnp.float32).at[:T].set(
        u_in[:, 0].astype(jnp.float32))
    # x-independent part of layer 1 (u*W1u + b1), computed once outside the
    # serial recurrence.  Tiny elementwise XLA op (<<1% of kernel time); it
    # streams into the kernel as tile-aligned (CHUNK, 64) VMEM blocks that
    # pipeline with compute, and it removes the whole-sequence SMEM residency.
    ucon = (u_flat[:, None] * w1u + b1).astype(jnp.float32)      # (t_pad, 64)
    # Fold the Euler step size into layer 2 so each step is a single add after
    # the cross-lane reduce (TS == 1.0 here, kept for generality).
    w2t_eff = (TS * w2t).astype(jnp.float32)                      # (2, 64)
    b2_col = (TS * b2).reshape(N_X, 1).astype(jnp.float32)        # (2, 1)
    x0_col = x0.reshape(N_X, 1).astype(jnp.float32)               # (2, 1)

    vmem = pltpu.MemorySpace.VMEM
    kernel = functools.partial(_ss_sim_kernel,
                               num_chunks=num_chunks, n_last=n_last)

    # Rough per-step work: 2 broadcast-MACs + add + relu on 64 lanes, one 2x64
    # multiply + cross-lane reduce, and two small adds.
    flops_per_step = 4 * N_FEAT + 2 * N_FEAT + 4 * N_FEAT + 4 * N_X
    param_bytes = 4 * (2 * N_X * N_FEAT + 2 * N_X)
    cost = pl.CostEstimate(
        flops=int(T * flops_per_step),
        transcendentals=0,
        bytes_accessed=int(4 * t_pad * (N_FEAT + 1) + param_bytes),
    )

    y_pad, x_last = pl.pallas_call(
        kernel,
        out_shape=(
            jax.ShapeDtypeStruct((num_chunks, ROWS, 128), jnp.float32),
            jax.ShapeDtypeStruct((N_X, 1), jnp.float32),
        ),
        grid=(num_chunks,),
        in_specs=[
            pl.BlockSpec(memory_space=vmem),                    # x0    (2, 1)
            pl.BlockSpec(memory_space=vmem),                    # w1x   (2, 64)
            pl.BlockSpec(memory_space=vmem),                    # w2t   (2, 64)
            pl.BlockSpec(memory_space=vmem),                    # b2    (2, 1)
            pl.BlockSpec((CHUNK, N_FEAT), lambda c: (c, 0)),    # ucon  per chunk
        ],
        out_specs=(
            pl.BlockSpec((1, ROWS, 128), lambda c: (c, 0, 0)),  # y tile per chunk
            pl.BlockSpec((N_X, 1), lambda c: (0, 0)),           # resident carry
        ),
        compiler_params=pltpu.CompilerParams(
            dimension_semantics=("arbitrary",)),   # sequential carry over time
        cost_estimate=cost,
    )(x0_col, w1x, w2t_eff, b2_col, ucon)

    y = y_pad.reshape(t_pad)[:T].reshape(T, 1)
    return y, x_last[:, 0]


def _reference_forward(u_in, x0, params):
    """Pure-JAX reference (lax.scan) with identical math."""
    w1x, w1u, b1, w2t, b2 = params

    def step(x, u_t):  # x: (2,), u_t: (1,)
        h = jnp.maximum(x @ w1x + u_t[0] * w1u[0] + b1[0], 0.0)
        dx = w2t @ h + b2[0]
        return x + TS * dx, x

    _, xs = jax.lax.scan(step, x0, u_in)   # xs: (T, 2) states before each update
    return xs[:, 0:1], xs[-1]


def init_params(key):
    """Deterministic small init (mimics NeuralStateSpaceModel init_small)."""
    k1, k2, k3 = jax.random.split(key, 3)
    w1 = 1e-2 * jax.random.normal(k1, (N_X + N_U, N_FEAT), jnp.float32)  # (3, 64)
    w1x = w1[:N_X, :]                                                    # (2, 64)
    w1u = w1[N_X:, :]                                                    # (1, 64)
    b1 = 1e-2 * jax.random.normal(k2, (1, N_FEAT), jnp.float32)          # (1, 64)
    w2t = 1e-2 * jax.random.normal(k3, (N_X, N_FEAT), jnp.float32)       # (2, 64)
    b2 = jnp.zeros((1, N_X), jnp.float32)                                # (1, 2)
    return (w1x, w1u, b1, w2t, b2)


if __name__ == "__main__":
    key = jax.random.PRNGKey(0)
    k_u, k_p, k_u2 = jax.random.split(key, 3)
    params = init_params(k_p)
    x0 = jnp.zeros((N_X,), jnp.float32)   # StateSpaceWrapper.x_0 = torch.zeros(2)

    # Small example consistent with the module (seq = 8, single chunk).
    T = 8
    u_in = jax.random.normal(k_u, (T, N_U), jnp.float32)       # (8, 1)
    y, new_x0 = state_space_wrapper_forward(u_in, x0, params)
    y = jax.block_until_ready(y)
    new_x0 = jax.block_until_ready(new_x0)
    y_ref, new_x0_ref = _reference_forward(u_in, x0, params)
    assert y.shape == (T, 1) and new_x0.shape == (N_X,)
    assert jnp.allclose(y, y_ref, rtol=1e-5, atol=1e-6), (y, y_ref)
    assert jnp.allclose(new_x0, new_x0_ref, rtol=1e-5, atol=1e-6), (new_x0, new_x0_ref)

    # Multi-chunk check: exercises the unguarded interior-chunk path, the
    # statically shortened last chunk + tail fill, and the state carry through
    # the resident xlast output block.  Slightly relaxed rtol: the (documented)
    # reassociation of b1/b2/u-term sums drifts a few ulps per step over 1500
    # serial steps.
    T2 = 1500
    u_in2 = jax.random.normal(k_u2, (T2, N_U), jnp.float32)
    y2, new_x0_2 = state_space_wrapper_forward(u_in2, x0, params)
    y2 = jax.block_until_ready(y2)
    new_x0_2 = jax.block_until_ready(new_x0_2)
    y2_ref, new_x0_2_ref = _reference_forward(u_in2, x0, params)
    assert jnp.allclose(y2, y2_ref, rtol=1e-3, atol=1e-6), (y2, y2_ref)
    assert jnp.allclose(new_x0_2, new_x0_2_ref, rtol=1e-3, atol=1e-6)

    print("KERNEL_OK")
</pallas_src>

<mosaic_0001>
module attributes {stable_mosaic.version = 11 : i64} {
  func.func @_ss_sim_kernel(%arg0: i32, %arg1: memref<2x1xf32, #tpu.memory_space<vmem>>, %arg2: memref<2x64xf32, #tpu.memory_space<vmem>>, %arg3: memref<2x64xf32, #tpu.memory_space<vmem>>, %arg4: memref<2x1xf32, #tpu.memory_space<vmem>>, %arg5: memref<1024x64xf32, #tpu.memory_space<vmem>>, %arg6: memref<1x8x128xf32, #tpu.memory_space<vmem>>, %arg7: memref<2x1xf32, #tpu.memory_space<vmem>>) attributes {dimension_semantics = [#tpu.dimension_semantics<arbitrary>], iteration_bounds = array<i64: 1>, scalar_prefetch = 0 : i64, scratch_operands = 0 : i64, tpu.core_type = #tpu.core_type<tc>, window_params = [{pipeline_mode = #tpu.pipeline_mode<synchronous>, transform_indices = @transform_0, window_bounds = array<i64: 2, 1>}, {pipeline_mode = #tpu.pipeline_mode<synchronous>, transform_indices = @transform_1, window_bounds = array<i64: 2, 64>}, {pipeline_mode = #tpu.pipeline_mode<synchronous>, transform_indices = @transform_2, window_bounds = array<i64: 2, 64>}, {pipeline_mode = #tpu.pipeline_mode<synchronous>, transform_indices = @transform_3, window_bounds = array<i64: 2, 1>}, {transform_indices = @transform_4, window_bounds = array<i64: 1024, 64>}, {transform_indices = @transform_5, window_bounds = array<i64: 1, 8, 128>}, {pipeline_mode = #tpu.pipeline_mode<synchronous>, transform_indices = @transform_6, window_bounds = array<i64: 2, 1>}]} {
    %c0_i32 = arith.constant 0 : i32
    %0 = arith.cmpi eq, %arg0, %c0_i32 : i32
    %1 = arith.extui %0 : i1 to i32
    %c0_i32_0 = arith.constant 0 : i32
    %2 = arith.cmpi ne, %1, %c0_i32_0 : i32
    scf.if %2 {
      %c0_37 = arith.constant 0 : index
      %c0_38 = arith.constant 0 : index
      %191 = vector.load %arg1[%c0_37, %c0_38] : memref<2x1xf32, #tpu.memory_space<vmem>>, vector<2x1xf32>
      %c0_39 = arith.constant 0 : index
      %c0_40 = arith.constant 0 : index
      %192 = vector.load %arg7[%c0_39, %c0_40] : memref<2x1xf32, #tpu.memory_space<vmem>>, vector<2x1xf32>
      tpu.vector_store %arg7[%c0_39, %c0_40], %191 {strides = array<i32>} : memref<2x1xf32, #tpu.memory_space<vmem>>, vector<2x1xf32>,
    } else {
    }
    %c0 = arith.constant 0 : index
    %c0_1 = arith.constant 0 : index
    %3 = vector.load %arg2[%c0, %c0_1] : memref<2x64xf32, #tpu.memory_space<vmem>>, vector<1x64xf32>
    %c1 = arith.constant 1 : index
    %c0_2 = arith.constant 0 : index
    %4 = vector.load %arg2[%c1, %c0_2] : memref<2x64xf32, #tpu.memory_space<vmem>>, vector<1x64xf32>
    %c0_3 = arith.constant 0 : index
    %c0_4 = arith.constant 0 : index
    %5 = vector.load %arg3[%c0_3, %c0_4] : memref<2x64xf32, #tpu.memory_space<vmem>>, vector<2x64xf32>
    %c0_5 = arith.constant 0 : index
    %c0_6 = arith.constant 0 : index
    %6 = vector.load %arg4[%c0_5, %c0_6] : memref<2x1xf32, #tpu.memory_space<vmem>>, vector<2x1xf32>
    %7 = tpu.iota {dimensions = array<i32: 0>} : vector<8x128xi32>
    %8 = tpu.iota {dimensions = array<i32: 1>} : vector<8x128xi32>
    %c128_i32 = arith.constant 128 : i32
    %9 = vector.broadcast %c128_i32 : i32 to vector<8x128xi32>
    %10 = arith.muli %7, %9 : vector<8x128xi32>
    %11 = arith.addi %10, %8 : vector<8x128xi32>
    %c0_7 = arith.constant 0 : index
    %c0_8 = arith.constant 0 : index
    %12 = vector.load %arg7[%c0_7, %c0_8] : memref<2x1xf32, #tpu.memory_space<vmem>>, vector<2x1xf32>
    %cst = arith.constant 0.000000e+00 : f32
    %13 = vector.broadcast %cst : f32 to vector<8x128xf32>
    %c0_i32_9 = arith.constant 0 : i32
    %14 = vector.broadcast %c0_i32_9 : i32 to vector<8x128xi32>
    %15 = arith.cmpi eq, %11, %14 : vector<8x128xi32>
    %16 = vector.extract_strided_slice %12 {offsets = [0, 0], sizes = [1, 1], strides = [1, 1]} : vector<2x1xf32> to vector<1x1xf32>
    %17 = vector.shape_cast %16 : vector<1x1xf32> to vector<1x1xf32>
    %18 = vector.broadcast %17 : vector<1x1xf32> to vector<8x128xf32>
    %19 = arith.select %15, %18, %13 : vector<8x128xi1>, vector<8x128xf32>
    %20 = arith.addf %12, %6 : vector<2x1xf32>
    %21 = arith.index_cast %c0_i32_9 : i32 to index
    %c0_10 = arith.constant 0 : index
    %22 = vector.load %arg5[%21, %c0_10] : memref<1024x64xf32, #tpu.memory_space<vmem>>, vector<1x64xf32>
    %23 = vector.extract_strided_slice %12 {offsets = [0, 0], sizes = [1, 1], strides = [1, 1]} : vector<2x1xf32> to vector<1x1xf32>
    %24 = vector.broadcast %23 : vector<1x1xf32> to vector<1x64xf32>
    %25 = arith.mulf %24, %3 : vector<1x64xf32>
    %26 = vector.extract_strided_slice %12 {offsets = [1, 0], sizes = [1, 1], strides = [1, 1]} : vector<2x1xf32> to vector<1x1xf32>
    %27 = vector.broadcast %26 : vector<1x1xf32> to vector<1x64xf32>
    %28 = arith.mulf %27, %4 : vector<1x64xf32>
    %29 = arith.addf %25, %28 : vector<1x64xf32>
    %30 = arith.addf %29, %22 : vector<1x64xf32>
    %cst_11 = arith.constant 0.000000e+00 : f32
    %31 = vector.broadcast %cst_11 : f32 to vector<1x64xf32>
    %32 = arith.maximumf %30, %31 : vector<1x64xf32>
    %33 = vector.broadcast %32 : vector<1x64xf32> to vector<2x64xf32>
    %34 = arith.mulf %33, %5 : vector<2x64xf32>
    %cst_12 = arith.constant dense<0.000000e+00> : vector<2xf32>
    %35 = vector.multi_reduction <add>, %34, %cst_12 [1] : vector<2x64xf32> to vector<2xf32>
    %36 = vector.shape_cast %35 : vector<2xf32> to vector<2x1xf32>
    %37 = arith.addf %20, %36 : vector<2x1xf32>
    %c1_i32 = arith.constant 1 : i32
    %38 = vector.broadcast %c1_i32 : i32 to vector<8x128xi32>
    %39 = arith.cmpi eq, %11, %38 : vector<8x128xi32>
    %40 = vector.extract_strided_slice %37 {offsets = [0, 0], sizes = [1, 1], strides = [1, 1]} : vector<2x1xf32> to vector<1x1xf32>
    %41 = vector.shape_cast %40 : vector<1x1xf32> to vector<1x1xf32>
    %42 = vector.broadcast %41 : vector<1x1xf32> to vector<8x128xf32>
    %43 = arith.select %39, %42, %19 : vector<8x128xi1>, vector<8x128xf32>
    %44 = arith.addf %37, %6 : vector<2x1xf32>
    %45 = arith.index_cast %c1_i32 : i32 to index
    %c0_13 = arith.constant 0 : index
    %46 = vector.load %arg5[%45, %c0_13] : memref<1024x64xf32, #tpu.memory_space<vmem>>, vector<1x64xf32>
    %47 = vector.extract_strided_slice %37 {offsets = [0, 0], sizes = [1, 1], strides = [1, 1]} : vector<2x1xf32> to vector<1x1xf32>
    %48 = vector.broadcast %47 : vector<1x1xf32> to vector<1x64xf32>
    %49 = arith.mulf %48, %3 : vector<1x64xf32>
    %50 = vector.extract_strided_slice %37 {offsets = [1, 0], sizes = [1, 1], strides = [1, 1]} : vector<2x1xf32> to vector<1x1xf32>
    %51 = vector.broadcast %50 : vector<1x1xf32> to vector<1x64xf32>
    %52 = arith.mulf %51, %4 : vector<1x64xf32>
    %53 = arith.addf %49, %52 : vector<1x64xf32>
    %54 = arith.addf %53, %46 : vector<1x64xf32>
    %cst_14 = arith.constant 0.000000e+00 : f32
    %55 = vector.broadcast %cst_14 : f32 to vector<1x64xf32>
    %56 = arith.maximumf %54, %55 : vector<1x64xf32>
    %57 = vector.broadcast %56 : vector<1x64xf32> to vector<2x64xf32>
    %58 = arith.mulf %57, %5 : vector<2x64xf32>
    %cst_15 = arith.constant dense<0.000000e+00> : vector<2xf32>
    %59 = vector.multi_reduction <add>, %58, %cst_15 [1] : vector<2x64xf32> to vector<2xf32>
    %60 = vector.shape_cast %59 : vector<2xf32> to vector<2x1xf32>
    %61 = arith.addf %44, %60 : vector<2x1xf32>
    %c2_i32 = arith.constant 2 : i32
    %62 = vector.broadcast %c2_i32 : i32 to vector<8x128xi32>
    %63 = arith.cmpi eq, %11, %62 : vector<8x128xi32>
    %64 = vector.extract_strided_slice %61 {offsets = [0, 0], sizes = [1, 1], strides = [1, 1]} : vector<2x1xf32> to vector<1x1xf32>
    %65 = vector.shape_cast %64 : vector<1x1xf32> to vector<1x1xf32>
    %66 = vector.broadcast %65 : vector<1x1xf32> to vector<8x128xf32>
    %67 = arith.select %63, %66, %43 : vector<8x128xi1>, vector<8x128xf32>
    %68 = arith.addf %61, %6 : vector<2x1xf32>
    %69 = arith.index_cast %c2_i32 : i32 to index
    %c0_16 = arith.constant 0 : index
    %70 = vector.load %arg5[%69, %c0_16] : memref<1024x64xf32, #tpu.memory_space<vmem>>, vector<1x64xf32>
    %71 = vector.extract_strided_slice %61 {offsets = [0, 0], sizes = [1, 1], strides = [1, 1]} : vector<2x1xf32> to vector<1x1xf32>
    %72 = vector.broadcast %71 : vector<1x1xf32> to vector<1x64xf32>
    %73 = arith.mulf %72, %3 : vector<1x64xf32>
    %74 = vector.extract_strided_slice %61 {offsets = [1, 0], sizes = [1, 1], strides = [1, 1]} : vector<2x1xf32> to vector<1x1xf32>
    %75 = vector.broadcast %74 : vector<1x1xf32> to vector<1x64xf32>
    %76 = arith.mulf %75, %4 : vector<1x64xf32>
    %77 = arith.addf %73, %76 : vector<1x64xf32>
    %78 = arith.addf %77, %70 : vector<1x64xf32>
    %cst_17 = arith.constant 0.000000e+00 : f32
    %79 = vector.broadcast %cst_17 : f32 to vector<1x64xf32>
    %80 = arith.maximumf %78, %79 : vector<1x64xf32>
    %81 = vector.broadcast %80 : vector<1x64xf32> to vector<2x64xf32>
    %82 = arith.mulf %81, %5 : vector<2x64xf32>
    %cst_18 = arith.constant dense<0.000000e+00> : vector<2xf32>
    %83 = vector.multi_reduction <add>, %82, %cst_18 [1] : vector<2x64xf32> to vector<2xf32>
    %84 = vector.shape_cast %83 : vector<2xf32> to vector<2x1xf32>
    %85 = arith.addf %68, %84 : vector<2x1xf32>
    %c3_i32 = arith.constant 3 : i32
    %86 = vector.broadcast %c3_i32 : i32 to vector<8x128xi32>
    %87 = arith.cmpi eq, %11, %86 : vector<8x128xi32>
    %88 = vector.extract_strided_slice %85 {offsets = [0, 0], sizes = [1, 1], strides = [1, 1]} : vector<2x1xf32> to vector<1x1xf32>
    %89 = vector.shape_cast %88 : vector<1x1xf32> to vector<1x1xf32>
    %90 = vector.broadcast %89 : vector<1x1xf32> to vector<8x128xf32>
    %91 = arith.select %87, %90, %67 : vector<8x128xi1>, vector<8x128xf32>
    %92 = arith.addf %85, %6 : vector<2x1xf32>
    %93 = arith.index_cast %c3_i32 : i32 to index
    %c0_19 = arith.constant 0 : index
    %94 = vector.load %arg5[%93, %c0_19] : memref<1024x64xf32, #tpu.memory_space<vmem>>, vector<1x64xf32>
    %95 = vector.extract_strided_slice %85 {offsets = [0, 0], sizes = [1, 1], strides = [1, 1]} : vector<2x1xf32> to vector<1x1xf32>
    %96 = vector.broadcast %95 : vector<1x1xf32> to vector<1x64xf32>
    %97 = arith.mulf %96, %3 : vector<1x64xf32>
    %98 = vector.extract_strided_slice %85 {offsets = [1, 0], sizes = [1, 1], strides = [1, 1]} : vector<2x1xf32> to vector<1x1xf32>
    %99 = vector.broadcast %98 : vector<1x1xf32> to vector<1x64xf32>
    %100 = arith.mulf %99, %4 : vector<1x64xf32>
    %101 = arith.addf %97, %100 : vector<1x64xf32>
    %102 = arith.addf %101, %94 : vector<1x64xf32>
    %cst_20 = arith.constant 0.000000e+00 : f32
    %103 = vector.broadcast %cst_20 : f32 to vector<1x64xf32>
    %104 = arith.maximumf %102, %103 : vector<1x64xf32>
    %105 = vector.broadcast %104 : vector<1x64xf32> to vector<2x64xf32>
    %106 = arith.mulf %105, %5 : vector<2x64xf32>
    %cst_21 = arith.constant dense<0.000000e+00> : vector<2xf32>
    %107 = vector.multi_reduction <add>, %106, %cst_21 [1] : vector<2x64xf32> to vector<2xf32>
    %108 = vector.shape_cast %107 : vector<2xf32> to vector<2x1xf32>
    %109 = arith.addf %92, %108 : vector<2x1xf32>
    %c4_i32 = arith.constant 4 : i32
    %110 = vector.broadcast %c4_i32 : i32 to vector<8x128xi32>
    %111 = arith.cmpi eq, %11, %110 : vector<8x128xi32>
    %112 = vector.extract_strided_slice %109 {offsets = [0, 0], sizes = [1, 1], strides = [1, 1]} : vector<2x1xf32> to vector<1x1xf32>
    %113 = vector.shape_cast %112 : vector<1x1xf32> to vector<1x1xf32>
    %114 = vector.broadcast %113 : vector<1x1xf32> to vector<8x128xf32>
    %115 = arith.select %111, %114, %91 : vector<8x128xi1>, vector<8x128xf32>
    %116 = arith.addf %109, %6 : vector<2x1xf32>
    %117 = arith.index_cast %c4_i32 : i32 to index
    %c0_22 = arith.constant 0 : index
    %118 = vector.load %arg5[%117, %c0_22] : memref<1024x64xf32, #tpu.memory_space<vmem>>, vector<1x64xf32>
    %119 = vector.extract_strided_slice %109 {offsets = [0, 0], sizes = [1, 1], strides = [1, 1]} : vector<2x1xf32> to vector<1x1xf32>
    %120 = vector.broadcast %119 : vector<1x1xf32> to vector<1x64xf32>
    %121 = arith.mulf %120, %3 : vector<1x64xf32>
    %122 = vector.extract_strided_slice %109 {offsets = [1, 0], sizes = [1, 1], strides = [1, 1]} : vector<2x1xf32> to vector<1x1xf32>
    %123 = vector.broadcast %122 : vector<1x1xf32> to vector<1x64xf32>
    %124 = arith.mulf %123, %4 : vector<1x64xf32>
    %125 = arith.addf %121, %124 : vector<1x64xf32>
    %126 = arith.addf %125, %118 : vector<1x64xf32>
    %cst_23 = arith.constant 0.000000e+00 : f32
    %127 = vector.broadcast %cst_23 : f32 to vector<1x64xf32>
    %128 = arith.maximumf %126, %127 : vector<1x64xf32>
    %129 = vector.broadcast %128 : vector<1x64xf32> to vector<2x64xf32>
    %130 = arith.mulf %129, %5 : vector<2x64xf32>
    %cst_24 = arith.constant dense<0.000000e+00> : vector<2xf32>
    %131 = vector.multi_reduction <add>, %130, %cst_24 [1] : vector<2x64xf32> to vector<2xf32>
    %132 = vector.shape_cast %131 : vector<2xf32> to vector<2x1xf32>
    %133 = arith.addf %116, %132 : vector<2x1xf32>
    %c5_i32 = arith.constant 5 : i32
    %134 = vector.broadcast %c5_i32 : i32 to vector<8x128xi32>
    %135 = arith.cmpi eq, %11, %134 : vector<8x128xi32>
    %136 = vector.extract_strided_slice %133 {offsets = [0, 0], sizes = [1, 1], strides = [1, 1]} : vector<2x1xf32> to vector<1x1xf32>
    %137 = vector.shape_cast %136 : vector<1x1xf32> to vector<1x1xf32>
    %138 = vector.broadcast %137 : vector<1x1xf32> to vector<8x128xf32>
    %139 = arith.select %135, %138, %115 : vector<8x128xi1>, vector<8x128xf32>
    %140 = arith.addf %133, %6 : vector<2x1xf32>
    %141 = arith.index_cast %c5_i32 : i32 to index
    %c0_25 = arith.constant 0 : index
    %142 = vector.load %arg5[%141, %c0_25] : memref<1024x64xf32, #tpu.memory_space<vmem>>, vector<1x64xf32>
    %143 = vector.extract_strided_slice %133 {offsets = [0, 0], sizes = [1, 1], strides = [1, 1]} : vector<2x1xf32> to vector<1x1xf32>
    %144 = vector.broadcast %143 : vector<1x1xf32> to vector<1x64xf32>
    %145 = arith.mulf %144, %3 : vector<1x64xf32>
    %146 = vector.extract_strided_slice %133 {offsets = [1, 0], sizes = [1, 1], strides = [1, 1]} : vector<2x1xf32> to vector<1x1xf32>
    %147 = vector.broadcast %146 : vector<1x1xf32> to vector<1x64xf32>
    %148 = arith.mulf %147, %4 : vector<1x64xf32>
    %149 = arith.addf %145, %148 : vector<1x64xf32>
    %150 = arith.addf %149, %142 : vector<1x64xf32>
    %cst_26 = arith.constant 0.000000e+00 : f32
    %151 = vector.broadcast %cst_26 : f32 to vector<1x64xf32>
    %152 = arith.maximumf %150, %151 : vector<1x64xf32>
    %153 = vector.broadcast %152 : vector<1x64xf32> to vector<2x64xf32>
    %154 = arith.mulf %153, %5 : vector<2x64xf32>
    %cst_27 = arith.constant dense<0.000000e+00> : vector<2xf32>
    %155 = vector.multi_reduction <add>, %154, %cst_27 [1] : vector<2x64xf32> to vector<2xf32>
    %156 = vector.shape_cast %155 : vector<2xf32> to vector<2x1xf32>
    %157 = arith.addf %140, %156 : vector<2x1xf32>
    %c6_i32 = arith.constant 6 : i32
    %158 = vector.broadcast %c6_i32 : i32 to vector<8x128xi32>
    %159 = arith.cmpi eq, %11, %158 : vector<8x128xi32>
    %160 = vector.extract_strided_slice %157 {offsets = [0, 0], sizes = [1, 1], strides = [1, 1]} : vector<2x1xf32> to vector<1x1xf32>
    %161 = vector.shape_cast %160 : vector<1x1xf32> to vector<1x1xf32>
    %162 = vector.broadcast %161 : vector<1x1xf32> to vector<8x128xf32>
    %163 = arith.select %159, %162, %139 : vector<8x128xi1>, vector<8x128xf32>
    %164 = arith.addf %157, %6 : vector<2x1xf32>
    %165 = arith.index_cast %c6_i32 : i32 to index
    %c0_28 = arith.constant 0 : index
    %166 = vector.load %arg5[%165, %c0_28] : memref<1024x64xf32, #tpu.memory_space<vmem>>, vector<1x64xf32>
    %167 = vector.extract_strided_slice %157 {offsets = [0, 0], sizes = [1, 1], strides = [1, 1]} : vector<2x1xf32> to vector<1x1xf32>
    %168 = vector.broadcast %167 : vector<1x1xf32> to vector<1x64xf32>
    %169 = arith.mulf %168, %3 : vector<1x64xf32>
    %170 = vector.extract_strided_slice %157 {offsets = [1, 0], sizes = [1, 1], strides = [1, 1]} : vector<2x1xf32> to vector<1x1xf32>
    %171 = vector.broadcast %170 : vector<1x1xf32> to vector<1x64xf32>
    %172 = arith.mulf %171, %4 : vector<1x64xf32>
    %173 = arith.addf %169, %172 : vector<1x64xf32>
    %174 = arith.addf %173, %166 : vector<1x64xf32>
    %cst_29 = arith.constant 0.000000e+00 : f32
    %175 = vector.broadcast %cst_29 : f32 to vector<1x64xf32>
    %176 = arith.maximumf %174, %175 : vector<1x64xf32>
    %177 = vector.broadcast %176 : vector<1x64xf32> to vector<2x64xf32>
    %178 = arith.mulf %177, %5 : vector<2x64xf32>
    %cst_30 = arith.constant dense<0.000000e+00> : vector<2xf32>
    %179 = vector.multi_reduction <add>, %178, %cst_30 [1] : vector<2x64xf32> to vector<2xf32>
    %180 = vector.shape_cast %179 : vector<2xf32> to vector<2x1xf32>
    %181 = arith.addf %164, %180 : vector<2x1xf32>
    %c7_i32 = arith.constant 7 : i32
    %c7_i32_31 = arith.constant 7 : i32
    %182 = vector.broadcast %c7_i32_31 : i32 to vector<8x128xi32>
    %183 = arith.cmpi sge, %11, %182 : vector<8x128xi32>
    %184 = vector.extract_strided_slice %181 {offsets = [0, 0], sizes = [1, 1], strides = [1, 1]} : vector<2x1xf32> to vector<1x1xf32>
    %185 = vector.shape_cast %184 : vector<1x1xf32> to vector<1x1xf32>
    %186 = vector.broadcast %185 : vector<1x1xf32> to vector<8x128xf32>
    %187 = arith.select %183, %186, %163 : vector<8x128xi1>, vector<8x128xf32>
    %188 = vector.shape_cast %187 : vector<8x128xf32> to vector<1x8x128xf32>
    %c0_32 = arith.constant 0 : index
    %c0_33 = arith.constant 0 : index
    %c0_34 = arith.constant 0 : index
    %189 = vector.load %arg6[%c0_32, %c0_33, %c0_34] : memref<1x8x128xf32, #tpu.memory_space<vmem>>, vector<1x8x128xf32>
    tpu.vector_store %arg6[%c0_32, %c0_33, %c0_34], %188 {strides = array<i32>} : memref<1x8x128xf32, #tpu.memory_space<vmem>>, vector<1x8x128xf32>,
    %c0_35 = arith.constant 0 : index
    %c0_36 = arith.constant 0 : index
    %190 = vector.load %arg7[%c0_35, %c0_36] : memref<2x1xf32, #tpu.memory_space<vmem>>, vector<2x1xf32>
    tpu.vector_store %arg7[%c0_35, %c0_36], %181 {strides = array<i32>} : memref<2x1xf32, #tpu.memory_space<vmem>>, vector<2x1xf32>,
    return
  }
  func.func @transform_0(%arg0: i32) -> (i32, i32) {
    %c0_i32 = arith.constant 0 : i32
    %c0_i32_0 = arith.constant 0 : i32
    %c0_i32_1 = arith.constant 0 : i32
    return %c0_i32, %c0_i32_0 : i32, i32
  }
  func.func @transform_1(%arg0: i32) -> (i32, i32) {
    %c0_i32 = arith.constant 0 : i32
    %c0_i32_0 = arith.constant 0 : i32
    %c0_i32_1 = arith.constant 0 : i32
    return %c0_i32, %c0_i32_0 : i32, i32
  }
  func.func @transform_2(%arg0: i32) -> (i32, i32) {
    %c0_i32 = arith.constant 0 : i32
    %c0_i32_0 = arith.constant 0 : i32
    %c0_i32_1 = arith.constant 0 : i32
    return %c0_i32, %c0_i32_0 : i32, i32
  }
  func.func @transform_3(%arg0: i32) -> (i32, i32) {
    %c0_i32 = arith.constant 0 : i32
    %c0_i32_0 = arith.constant 0 : i32
    %c0_i32_1 = arith.constant 0 : i32
    return %c0_i32, %c0_i32_0 : i32, i32
  }
  func.func @transform_4(%arg0: i32) -> (i32, i32) {
    %c0_i32 = arith.constant 0 : i32
    %c0_i32_0 = arith.constant 0 : i32
    return %arg0, %c0_i32 : i32, i32
  }
  func.func @transform_5(%arg0: i32) -> (i32, i32, i32) {
    %c0_i32 = arith.constant 0 : i32
    %c0_i32_0 = arith.constant 0 : i32
    %c0_i32_1 = arith.constant 0 : i32
    return %arg0, %c0_i32, %c0_i32_0 : i32, i32, i32
  }
  func.func @transform_6(%arg0: i32) -> (i32, i32) {
    %c0_i32 = arith.constant 0 : i32
    %c0_i32_0 = arith.constant 0 : i32
    %c0_i32_1 = arith.constant 0 : i32
    return %c0_i32, %c0_i32_0 : i32, i32
  }
}

</mosaic_0001>

<bundles_post_ra>
// kernel: tpu_custom_call.1
= control target key start
LH: loop header
LB: loop body
LE: loop exit
PB: predicated region body
PF: predicated region fallthrough
CT: control target
= control target key end

     0   :  { %vm28_vm0 = vcmask 1024   ;;  %v319_v1 = vmov 0   ;;  %s477_s0 = inlined_call_operand.vmem [shape: f32[2,1], index: 0, kind: input, shape index: {}]   ;;  %s478_s1 = inlined_call_operand.vmem [shape: f32[2,64], index: 1, kind: input, shape index: {}]   ;;  %s479_s2 = inlined_call_operand.vmem [shape: f32[2,64], index: 2, kind: input, shape index: {}]   ;;  %s480_s3 = inlined_call_operand.vmem [shape: f32[2,1], index: 3, kind: input, shape index: {}]   ;;  %s481_s4 = inlined_call_operand.vmem [shape: f32[1024,64], index: 4, kind: input, shape index: {}]   ;;  %s482_s5 = inlined_call_operand.hbm [shape: f32[1,8,128], index: 5, kind: output, shape index: {0}]   ;;  %s483_s6 = inlined_call_operand.vmem [shape: f32[2,1], index: 6, kind: output, shape index: {1}]  }
   0x1   :  { %v27_v0 = vld [vmem:[%s477_s0] sm:$0x3]  ;;  %293 = vset.pattern.permute.xlu0 %v319_v1  ;;  %294 = vset.pattern.permute.xlu1 %v319_v1 }
   0x2   :  { %29 = vst.msk [vmem:[%s483_s6] sm:$0x3] %vm28_vm0, %v27_v0 }
   0x3   :  { %12 = vsyncpa [#allocation3], 0  ;;  %v31_v3 = vld [vmem:[%s478_s1 + $0x1] sm:$0x1]  ;;  %v34_v5 = vlaneseq  ;;  %v374_v6 = vld [vmem:[%s478_s1] sm:$0x1] }
   0x4   :  { %v369_v4 = vrot.slane %v31_v3, 7  ;;  %v48_v12 = vld [vmem:[%s481_s4] sm:$0x1]  ;;  %vm69_vm1 = vcmask 517120   ;;  %v81_v32 = vld [vmem:[%s481_s4 + $0x1] sm:$0x1] }
   0x5   :  { %v35_v11 = vshrl.u32 %v34_v5, 7  ;;  %v386_v17 = vld [vmem:[%s479_s2] sm:$0x3]  ;;  %v37_v21 = vand.u32 127, %v34_v5  ;;  %v110_v46 = vld [vmem:[%s481_s4 + $0x2] sm:$0x1] }
   0x6   :  { %v396_v24 = vld [vmem:[%s480_s3] sm:$0x3]  ;;  %v139_v60 = vld [vmem:[%s481_s4 + $0x3] sm:$0x1]  ;;  %s320_s28 = smov [#allocation2]  }
   0x7   :  { %v381_v15 = vsub.s32 0, %v35_v11  ;;  %v38_v22 = vmul.u32 128, %v35_v11  ;;  %s263_s0 = sshll.u32 %s320_s28, 4  ;;  %s264_s0 = int_to_ptr.vmem [resolvable:$true] %s263_s0 }
   0x8   :  { %s295_s30 = scalar_lea.vmem %s264_s0, 128  ;;  %p300_p1 = scmp.lt.s32.totalorder %s264_s0, %s264_s0 }
   0x9   :  { %v40_v2 = vld [vmem:[%s483_s6] sm:$0x3]  ;;  %v391_v23 = vadd.s32 %v38_v22, %v37_v21  ;;  %p296_p0 = scmp.ne.s32.totalorder %s264_s0, %s295_s30  ;;  %p301_p2 = scmp.lt.s32.totalorder %s295_s30, %s295_s30 }
   0xa   :  { %50 = vperm.xlu0 %293, %v40_v2   ;;  %275 = vpush %v40_v2  ;;  %v47_v25 = vadd.f32 %v40_v2, %v396_v24 }
   0xb   :  { %vm41_vm2 = vcmp.eq.s32.totalorder %v391_v23, 0  ;;  %vm74_vm3 = vcmp.eq.s32.totalorder %v391_v23, 1  ;;  %vm103_vm4 = vcmp.eq.s32.totalorder %v391_v23, 2  ;;  %vm132_vm5 = vcmp.eq.s32.totalorder %v391_v23, 3  ;;  %p302_p3 = por %p301_p2, %p300_p1 }
   0xc   :  { %vm161_vm6 = vcmp.eq.s32.totalorder %v391_v23, 4  ;;  %vm190_vm7 = vcmp.eq.s32.totalorder %v391_v23, 5  ;;  %vm219_vm8 = vcmp.eq.s32.totalorder %v391_v23, 6  ;;  %vm248_vm9 = vcmp.ge.s32.totalorder %v391_v23, 7 }
   0xd   :  { %p303_p4 = pnand %p302_p3, %p296_p0 }
  0x89   :  { %v51_v7 = vpop.permute.xlu0 %50 }
  0x8a   :  { %v57_v8 = vmul.f32 %v369_v4, %v51_v7  ;;  %v53_v9 = vmul.f32 %v51_v7, %v374_v6 }
  0x8c   :  { %v59_v10 = vrot.slane %v57_v8, 1 }
  0x8e   :  { %v61_v13 = vadd.f32 %v59_v10, %v53_v9 }
  0x90   :  { %v62_v14 = vadd.f32 %v61_v13, %v48_v12  ;;  %v168_v12 = vld [vmem:[%s481_s4 + $0x4] sm:$0x1] }
  0x92   :  { %v63_v16 = vmax.f32 %v62_v14, 0.0 }
  0x94   :  { %v67_v18 = vrot.slane %v63_v16, %v381_v15 }
  0x96   :  { %v68_v19 = vmul.f32 %v67_v18, %v386_v17 }
  0x98   :  { %v70_v20 = vsel %vm69_vm1, %v68_v19, 0.0 }
  0x99   :  { %71 = vadd.xlane.f32.xlu0 %v70_v20 }
 0x126   :  { %v72_v26 = vpop.xlane.xlu0 %71 }
 0x127   :  { %v73_v27 = vadd.f32 %v72_v26, %v47_v25 }
 0x129   :  { %83 = vperm.xlu1 %294, %v73_v27   ;;  %277 = vpush %v73_v27  ;;  %v80_v39 = vadd.f32 %v73_v27, %v396_v24 }
 0x1a8   :  { %v84_v28 = vpop.permute.xlu1 %83 }
 0x1a9   :  { %v87_v29 = vmul.f32 %v84_v28, %v369_v4  ;;  %v86_v30 = vmul.f32 %v84_v28, %v374_v6 }
 0x1ab   :  { %v89_v31 = vrot.slane %v87_v29, 1 }
 0x1ad   :  { %v91_v33 = vadd.f32 %v89_v31, %v86_v30  ;;  %v197_v30 = vld [vmem:[%s481_s4 + $0x5] sm:$0x1] }
 0x1af   :  { %v92_v34 = vadd.f32 %v91_v33, %v81_v32 }
 0x1b1   :  { %v93_v35 = vmax.f32 %v92_v34, 0.0 }
 0x1b3   :  { %v97_v36 = vrot.slane %v93_v35, %v381_v15 }
 0x1b5   :  { %v98_v37 = vmul.f32 %v97_v36, %v386_v17 }
 0x1b7   :  { %v99_v38 = vsel %vm69_vm1, %v98_v37, 0.0 }
 0x1b8   :  { %100 = vadd.xlane.f32.xlu1 %v99_v38 }
 0x245   :  { %v101_v40 = vpop.xlane.xlu1 %100 }
 0x246   :  { %v102_v41 = vadd.f32 %v101_v40, %v80_v39 }
 0x248   :  { %112 = vperm.xlu0 %293, %v102_v41   ;;  %279 = vpush %v102_v41  ;;  %v109_v53 = vadd.f32 %v102_v41, %v396_v24 }
 0x2c7   :  { %v113_v42 = vpop.permute.xlu0 %112 }
 0x2c8   :  { %v116_v43 = vmul.f32 %v113_v42, %v369_v4  ;;  %v115_v44 = vmul.f32 %v113_v42, %v374_v6 }
 0x2ca   :  { %v118_v45 = vrot.slane %v116_v43, 1 }
 0x2cc   :  { %v120_v47 = vadd.f32 %v118_v45, %v115_v44  ;;  %v226_v44 = vld [vmem:[%s481_s4 + $0x6] sm:$0x1]  ;;  %s276_s4 = spop %275 }
 0x2cd   :  { %s278_s23 = spop %277 }
 0x2ce   :  { %v121_v48 = vadd.f32 %v120_v47, %v110_v46  ;;  %s280_s24 = spop %279 }
 0x2d0   :  { %v122_v49 = vmax.f32 %v121_v48, 0.0 }
 0x2d2   :  { %v126_v50 = vrot.slane %v122_v49, %v381_v15 }
 0x2d4   :  { %v127_v51 = vmul.f32 %v126_v50, %v386_v17 }
 0x2d6   :  { %v128_v52 = vsel %vm69_vm1, %v127_v51, 0.0 }
 0x2d7   :  { %129 = vadd.xlane.f32.xlu1 %v128_v52 }
 0x364   :  { %v130_v54 = vpop.xlane.xlu1 %129 }
 0x365   :  { %v131_v55 = vadd.f32 %v130_v54, %v109_v53 }
 0x367   :  { %141 = vperm.xlu1 %294, %v131_v55   ;;  %281 = vpush %v131_v55  ;;  %v138_v3 = vadd.f32 %v131_v55, %v396_v24 }
 0x398   :  { %s282_s25 = spop %281 }
 0x399   :  { %v135_v53 = vstv %s282_s25 }
 0x3e6   :  { %v142_v56 = vpop.permute.xlu1 %141 }
 0x3e7   :  { %v145_v57 = vmul.f32 %v142_v56, %v369_v4  ;;  %v144_v58 = vmul.f32 %v142_v56, %v374_v6 }
 0x3e9   :  { %v147_v59 = vrot.slane %v145_v57, 1 }
 0x3eb   :  { %v149_v61 = vadd.f32 %v147_v59, %v144_v58 }
 0x3ed   :  { %v150_v62 = vadd.f32 %v149_v61, %v139_v60 }
 0x3ef   :  { %v151_v63 = vmax.f32 %v150_v62, 0.0 }
 0x3f1   :  { %v155_v0 = vrot.slane %v151_v63, %v381_v15 }
 0x3f3   :  { %v156_v1 = vmul.f32 %v155_v0, %v386_v17 }
 0x3f5   :  { %v157_v2 = vsel %vm69_vm1, %v156_v1, 0.0 }
 0x3f6   :  { %158 = vadd.xlane.f32.xlu0 %v157_v2 }
 0x483   :  { %v159_v5 = vpop.xlane.xlu0 %158 }
 0x484   :  { %v160_v7 = vadd.f32 %v159_v5, %v138_v3 }
 0x486   :  { %170 = vperm.xlu1 %294, %v160_v7   ;;  %283 = vpush %v160_v7  ;;  %v167_v21 = vadd.f32 %v160_v7, %v396_v24 }
 0x4b7   :  { %s284_s26 = spop %283 }
 0x4b8   :  { %v164_v55 = vstv %s284_s26 }
 0x505   :  { %v171_v8 = vpop.permute.xlu1 %170 }
 0x506   :  { %v174_v9 = vmul.f32 %v171_v8, %v369_v4  ;;  %v173_v10 = vmul.f32 %v171_v8, %v374_v6 }
 0x508   :  { %v176_v11 = vrot.slane %v174_v9, 1 }
 0x50a   :  { %v178_v13 = vadd.f32 %v176_v11, %v173_v10 }
 0x50c   :  { %v179_v14 = vadd.f32 %v178_v13, %v168_v12 }
 0x50e   :  { %v180_v16 = vmax.f32 %v179_v14, 0.0 }
 0x510   :  { %v184_v18 = vrot.slane %v180_v16, %v381_v15 }
 0x512   :  { %v185_v19 = vmul.f32 %v184_v18, %v386_v17 }
 0x514   :  { %v186_v20 = vsel %vm69_vm1, %v185_v19, 0.0 }
 0x515   :  { %187 = vadd.xlane.f32.xlu1 %v186_v20 }
 0x5a2   :  { %v188_v22 = vpop.xlane.xlu1 %187 }
 0x5a3   :  { %v189_v25 = vadd.f32 %v188_v22, %v167_v21 }
 0x5a5   :  { %199 = vperm.xlu0 %293, %v189_v25   ;;  %285 = vpush %v189_v25  ;;  %v196_v37 = vadd.f32 %v189_v25, %v396_v24 }
 0x5d6   :  { %s286_s27 = spop %285 }
 0x5d7   :  { %v193_v57 = vstv %s286_s27 }
 0x624   :  { %v200_v26 = vpop.permute.xlu0 %199 }
 0x625   :  { %v203_v27 = vmul.f32 %v200_v26, %v369_v4  ;;  %v202_v28 = vmul.f32 %v200_v26, %v374_v6 }
 0x627   :  { %v205_v29 = vrot.slane %v203_v27, 1 }
 0x629   :  { %v207_v31 = vadd.f32 %v205_v29, %v202_v28 }
 0x62b   :  { %v208_v32 = vadd.f32 %v207_v31, %v197_v30 }
 0x62d   :  { %v209_v33 = vmax.f32 %v208_v32, 0.0 }
 0x62f   :  { %v213_v34 = vrot.slane %v209_v33, %v381_v15 }
 0x631   :  { %v214_v35 = vmul.f32 %v213_v34, %v386_v17 }
 0x633   :  { %v215_v36 = vsel %vm69_vm1, %v214_v35, 0.0 }
 0x634   :  { %216 = vadd.xlane.f32.xlu1 %v215_v36 }
 0x6c1   :  { %v217_v38 = vpop.xlane.xlu1 %216 }
 0x6c2   :  { %v218_v39 = vadd.f32 %v217_v38, %v196_v37 }
 0x6c4   :  { %228 = vperm.xlu1 %294, %v218_v39   ;;  %287 = vpush %v218_v39  ;;  %v225_v51 = vadd.f32 %v218_v39, %v396_v24  ;;  %v106_v24 = vstv %s280_s24 }
 0x743   :  { %v229_v40 = vpop.permute.xlu1 %228 }
 0x744   :  { %v232_v41 = vmul.f32 %v229_v40, %v369_v4  ;;  %v231_v42 = vmul.f32 %v229_v40, %v374_v6  ;;  %v44_v6 = vstv %s276_s4 }
 0x746   :  { %v234_v43 = vrot.slane %v232_v41, 1 }
 0x748   :  { %v236_v45 = vadd.f32 %v234_v43, %v231_v42 }
 0x74a   :  { %v237_v46 = vadd.f32 %v236_v45, %v226_v44 }
 0x74c   :  { %v238_v47 = vmax.f32 %v237_v46, 0.0 }
 0x74e   :  { %v242_v48 = vrot.slane %v238_v47, %v381_v15  ;;  %v46_v15 = vsel %vm41_vm2, %v44_v6, 0.0 }
 0x750   :  { %v243_v49 = vmul.f32 %v242_v48, %v386_v17  ;;  %v77_v17 = vstv %s278_s23 }
 0x751   :  { %v79_v54 = vsel %vm74_vm3, %v77_v17, %v46_v15 }
 0x752   :  { %v244_v50 = vsel %vm69_vm1, %v243_v49, 0.0  ;;  %v108_v56 = vsel %vm103_vm4, %v106_v24, %v79_v54 }
 0x753   :  { %245 = vadd.xlane.f32.xlu0 %v244_v50  ;;  %v137_v58 = vsel %vm132_vm5, %v135_v53, %v108_v56 }
 0x754   :  { %v166_v60 = vsel %vm161_vm6, %v164_v55, %v137_v58 }
 0x755   :  { %v195_v61 = vsel %vm190_vm7, %v193_v57, %v166_v60 }
 0x7e0   :  { %v246_v4 = vpop.xlane.xlu0 %245 }
 0x7e1   :  { %v247_v52 = vadd.f32 %v246_v4, %v225_v51 }
 0x7e3   :  { %256 = vst.msk [vmem:[%s483_s6] sm:$0x3] %vm28_vm0, %v247_v52  ;;  %s288_s6 = spop %287 }
 0x7e4   :  { %289 = vpush %v247_v52  ;;  %v222_v59 = vstv %s288_s6 }
 0x7e5   :  { %v224_v62 = vsel %vm219_vm8, %v222_v59, %v195_v61 }
 0x815   :  { %s290_s29 = spop %289 }
 0x816   :  { %v251_v63 = vstv %s290_s29 }
 0x817   :  { %v253_v0 = vsel %vm248_vm9, %v251_v63, %v224_v62 }
 0x818   :  { %254 = vst [vmem:[#allocation2] sm:$0xff] %v253_v0 }
 0x819   :  { %306 = shalt.err (!%p303_p4)
}
 0x81a   :  { %s307_s9 = scalar_lea.hbm %s482_s5, 128 }
 0x81b   :  { %p308_p5 = scmp.ne.s32.totalorder %s482_s5, %s307_s9  ;;  %p311_p6 = scmp.lt.u32.totalorder %s307_s9, %s482_s5 }
 0x81d   :  { %p313_p7 = pnand %p311_p6, %p308_p5 }
 0x81f   :  { %316 = shalt.err (!%p313_p7)
}
 0x820   :  { %266 = dma.vmem_to_hbm [thread:$0]  %s264_s0, 128, %s482_s5, [#allocation3]  }
 0x821   :  { %317 = dma.done.wait [#allocation3], 128  }
 0x822   :  { %318 = vsyncadd [#allocation3], 4294967168 }
 0x823   :  { %274 = vsyncpa [#allocation3], 1 }

</bundles_post_ra>
